<compile_context>
chip_gen: v6e
topology: v6e:2x2x1
jax: 0.10.0
libtpu: 0.0.40
codegen_flags: <defaults>
</compile_context>

<pallas_src>
import jax
import jax.numpy as jnp
from jax import lax
from jax.experimental import pallas as pl
from jax.experimental.pallas import tpu as pltpu


def _gin_kernel(ids_ref, adj_ref, pool_ref, emb_ref, w1_ref, b1_ref,
                w2_ref, b2_ref, out_ref):
    """Fused GIN forward for one tile of TB padded graphs.

    ids  : [TB, N]    int32  node-type ids (pad nodes use id 0; masked via adj/pool)
    adj  : [TB, N, N] bf16   A_hat = I + A with pad rows/cols zeroed
    pool : [TB, N]    f32    readout weights = node_mask / num_nodes  (mean_nodes)
    emb  : [V, H]     bf16   embedding table            (VMEM-resident across grid)
    w1,w2: [H, H]     bf16   Linear weights, stored [in_features, out_features]
    b1,b2: [1, H]     f32    Linear biases
    out  : [TB, H]    f32    per-graph readout
    """
    tb, n = ids_ref.shape
    v, h = emb_ref.shape

    # ---- Embedding lookup fused in-kernel as a one-hot MXU matmul (exact). ----
    ids = ids_ref[...]                                                   # [TB, N] i32
    iota_v = lax.broadcasted_iota(jnp.int32, (tb, n, v), 2)
    onehot = (ids[:, :, None] == iota_v).astype(jnp.bfloat16)            # [TB, N, V]
    h0 = jnp.dot(onehot.reshape(tb * n, v), emb_ref[...],
                 preferred_element_type=jnp.float32)                     # [TB*N, H] f32
    # Rows equal bf16 table rows exactly -> this cast is lossless.
    h0 = h0.astype(jnp.bfloat16).reshape(tb, n, h)

    adj = adj_ref[...]                                                   # [TB, N, N]

    # ---- GINConv 1: lin1( h_i + sum_{j in N(i)} h_j ), then ReLU. ----
    m1 = jnp.einsum('bij,bjh->bih', adj, h0,
                    preferred_element_type=jnp.float32)                  # [TB, N, H]
    z1 = jnp.dot(m1.astype(jnp.bfloat16).reshape(tb * n, h), w1_ref[...],
                 preferred_element_type=jnp.float32) + b1_ref[...]
    h1 = jnp.maximum(z1, 0.0).astype(jnp.bfloat16).reshape(tb, n, h)

    # ---- GINConv 2 (no activation). ----
    m2 = jnp.einsum('bij,bjh->bih', adj, h1,
                    preferred_element_type=jnp.float32)
    z2 = jnp.dot(m2.astype(jnp.bfloat16).reshape(tb * n, h), w2_ref[...],
                 preferred_element_type=jnp.float32) + b2_ref[...]
    h2 = z2.reshape(tb, n, h)                                            # f32

    # ---- dgl.mean_nodes: masked mean over the real nodes of each graph. ----
    pooled = jnp.sum(pool_ref[...][:, :, None] * h2, axis=1)             # [TB, H] f32
    out_ref[...] = pooled.astype(out_ref.dtype)


def gin4drug_struc_forward(node_ids, adj_hat, pool_w, params, *, tile_graphs=8):
    """Runs the fused GIN kernel over a batch of padded graphs.

    node_ids: [B, N] int32, adj_hat: [B, N, N] bf16, pool_w: [B, N] f32
    params: emb [V,H] bf16, w1/w2 [H,H] bf16, b1/b2 [1,H] f32
    Returns [B, H] f32 (per-graph mean-pooled node features).
    """
    b, n = node_ids.shape
    v, h = params["emb"].shape
    tb = min(tile_graphs, b)
    assert b % tb == 0, "batch of graphs must be divisible by the graph tile"
    assert tb == b or tb % 8 == 0, "graph tile must be a multiple of 8 (sublane rule)"
    grid = (pl.cdiv(b, tb),)

    # Per-graph tensors: blocked along the graph axis.  Parameters: constant
    # index_map -> loaded once, VMEM-resident across all grid iterations.
    in_specs = [
        pl.BlockSpec((tb, n), lambda i: (i, 0)),          # node ids
        pl.BlockSpec((tb, n, n), lambda i: (i, 0, 0)),    # A_hat
        pl.BlockSpec((tb, n), lambda i: (i, 0)),          # pooling weights
        pl.BlockSpec((v, h), lambda i: (0, 0)),           # embedding table
        pl.BlockSpec((h, h), lambda i: (0, 0)),           # w1
        pl.BlockSpec((1, h), lambda i: (0, 0)),           # b1
        pl.BlockSpec((h, h), lambda i: (0, 0)),           # w2
        pl.BlockSpec((1, h), lambda i: (0, 0)),           # b2
    ]
    out_spec = pl.BlockSpec((tb, h), lambda i: (i, 0))

    return pl.pallas_call(
        _gin_kernel,
        out_shape=jax.ShapeDtypeStruct((b, h), jnp.float32),
        grid_spec=pltpu.PrefetchScalarGridSpec(
            num_scalar_prefetch=0,
            grid=grid,
            in_specs=in_specs,
            out_specs=out_spec,
        ),
        compiler_params=pltpu.CompilerParams(
            dimension_semantics=("parallel",),    # graph tiles are independent
        ),
    )(node_ids, adj_hat, pool_w,
      params["emb"], params["w1"], params["b1"], params["w2"], params["b2"])


def _reference_forward(node_ids, adj_hat, pool_w, params):
    """Pure-JAX reference with the same bf16-storage / f32-accumulation numerics."""
    h0 = jnp.take(params["emb"], node_ids, axis=0)                       # [B,N,H] bf16
    m1 = jnp.einsum('bij,bjh->bih', adj_hat, h0,
                    preferred_element_type=jnp.float32)
    z1 = jnp.einsum('bnh,hk->bnk', m1.astype(jnp.bfloat16), params["w1"],
                    preferred_element_type=jnp.float32) + params["b1"]
    h1 = jnp.maximum(z1, 0.0).astype(jnp.bfloat16)
    m2 = jnp.einsum('bij,bjh->bih', adj_hat, h1,
                    preferred_element_type=jnp.float32)
    z2 = jnp.einsum('bnh,hk->bnk', m2.astype(jnp.bfloat16), params["w2"],
                    preferred_element_type=jnp.float32) + params["b2"]
    return jnp.sum(pool_w[:, :, None] * z2, axis=1)


if __name__ == "__main__":
    # Small shapes consistent with the module:
    #   in_feats (node-type vocab) = 32, h_feats = 128 (lane-dense),
    #   B = 16 padded graphs, N_max = 16 nodes per graph, graph tile TB = 8.
    B, N, V, H = 16, 16, 32, 128
    TB = 8

    key = jax.random.PRNGKey(0)
    k_nn, k_ids, k_edge, k_emb, k_l1, k_l2 = jax.random.split(key, 6)

    num_nodes = jax.random.randint(k_nn, (B,), 4, N + 1)                 # 4..N real nodes
    node_ids = jax.random.randint(k_ids, (B, N), 0, V).astype(jnp.int32)
    node_mask = (jnp.arange(N)[None, :] < num_nodes[:, None]).astype(jnp.float32)

    # Random directed edges (p=0.3, no self edges); A_hat = I + A, with rows/cols of
    # pad nodes zeroed so they neither send nor receive messages.
    rand = jax.random.uniform(k_edge, (B, N, N))
    a = (rand < 0.3).astype(jnp.float32) * (1.0 - jnp.eye(N)[None])
    a_hat = (a + jnp.eye(N)[None]) * node_mask[:, :, None] * node_mask[:, None, :]
    a_hat = a_hat.astype(jnp.bfloat16)                                   # 0/1: exact

    pool_w = node_mask / num_nodes[:, None].astype(jnp.float32)          # mean_nodes

    # Parameters with PyTorch default inits; weights stored bf16, biases f32.
    emb = jax.random.normal(k_emb, (V, H), jnp.float32)                  # Embedding: N(0,1)

    def init_linear(k, fan_in, fan_out):
        kw, kb = jax.random.split(k)
        bound = 1.0 / jnp.sqrt(float(fan_in))
        w = jax.random.uniform(kw, (fan_in, fan_out), jnp.float32, -bound, bound)
        bias = jax.random.uniform(kb, (1, fan_out), jnp.float32, -bound, bound)
        return w, bias

    w1, b1 = init_linear(k_l1, H, H)
    w2, b2 = init_linear(k_l2, H, H)
    params = {
        "emb": emb.astype(jnp.bfloat16),
        "w1": w1.astype(jnp.bfloat16), "b1": b1,
        "w2": w2.astype(jnp.bfloat16), "b2": b2,
    }

    out = gin4drug_struc_forward(node_ids, a_hat, pool_w, params, tile_graphs=TB)
    out = jax.block_until_ready(out)

    ref = _reference_forward(node_ids, a_hat, pool_w, params)
    assert out.shape == (B, H)
    max_err = jnp.max(jnp.abs(out - ref))
    assert jnp.allclose(out, ref, atol=1e-2, rtol=1e-2), f"mismatch, max err {max_err}"

    print("KERNEL_OK")
</pallas_src>

<mosaic_0001>
module attributes {stable_mosaic.version = 11 : i64} {
  func.func @_gin_kernel(%arg0: i32, %arg1: memref<8x16xi32, #tpu.memory_space<vmem>>, %arg2: memref<8x16x16xbf16, #tpu.memory_space<vmem>>, %arg3: memref<8x16xf32, #tpu.memory_space<vmem>>, %arg4: memref<32x128xbf16, #tpu.memory_space<vmem>>, %arg5: memref<128x128xbf16, #tpu.memory_space<vmem>>, %arg6: memref<1x128xf32, #tpu.memory_space<vmem>>, %arg7: memref<128x128xbf16, #tpu.memory_space<vmem>>, %arg8: memref<1x128xf32, #tpu.memory_space<vmem>>, %arg9: memref<8x128xf32, #tpu.memory_space<vmem>>) attributes {dimension_semantics = [#tpu.dimension_semantics<parallel>], iteration_bounds = array<i64: 2>, scalar_prefetch = 0 : i64, scratch_operands = 0 : i64, tpu.core_type = #tpu.core_type<tc>, window_params = [{transform_indices = @transform_0, window_bounds = array<i64: 8, 16>}, {transform_indices = @transform_1, window_bounds = array<i64: 8, 16, 16>}, {transform_indices = @transform_2, window_bounds = array<i64: 8, 16>}, {pipeline_mode = #tpu.pipeline_mode<synchronous>, transform_indices = @transform_3, window_bounds = array<i64: 32, 128>}, {pipeline_mode = #tpu.pipeline_mode<synchronous>, transform_indices = @transform_4, window_bounds = array<i64: 128, 128>}, {pipeline_mode = #tpu.pipeline_mode<synchronous>, transform_indices = @transform_5, window_bounds = array<i64: 1, 128>}, {pipeline_mode = #tpu.pipeline_mode<synchronous>, transform_indices = @transform_6, window_bounds = array<i64: 128, 128>}, {pipeline_mode = #tpu.pipeline_mode<synchronous>, transform_indices = @transform_7, window_bounds = array<i64: 1, 128>}, {transform_indices = @transform_8, window_bounds = array<i64: 8, 128>}]} {
    %c0 = arith.constant 0 : index
    %c0_0 = arith.constant 0 : index
    %0 = vector.load %arg1[%c0, %c0_0] : memref<8x16xi32, #tpu.memory_space<vmem>>, vector<8x16xi32>
    %1 = tpu.iota {dimensions = array<i32: 2>} : vector<8x16x32xi32>
    %2 = vector.shape_cast %0 : vector<8x16xi32> to vector<8x16x1xi32>
    %3 = vector.broadcast %2 : vector<8x16x1xi32> to vector<8x16x32xi32>
    %4 = arith.cmpi eq, %3, %1 : vector<8x16x32xi32>
    %5 = arith.extui %4 : vector<8x16x32xi1> to vector<8x16x32xi32>
    %6 = arith.sitofp %5 : vector<8x16x32xi32> to vector<8x16x32xf32>
    %7 = arith.truncf %6 : vector<8x16x32xf32> to vector<8x16x32xbf16>
    %8 = vector.shape_cast %7 : vector<8x16x32xbf16> to vector<128x32xbf16>
    %c0_1 = arith.constant 0 : index
    %c0_2 = arith.constant 0 : index
    %9 = vector.load %arg4[%c0_1, %c0_2] : memref<32x128xbf16, #tpu.memory_space<vmem>>, vector<32x128xbf16>
    %cst = arith.constant dense<0.000000e+00> : vector<128x128xf32>
    %10 = tpu.matmul %8, %9, %cst {dimension_numbers = #tpu.dot_dimension_numbers<[1], [0], [0], [1], [0, 0, 1, 1], [], []>} : vector<128x32xbf16>, vector<32x128xbf16>, vector<128x128xf32> -> vector<128x128xf32>
    %11 = arith.truncf %10 : vector<128x128xf32> to vector<128x128xbf16>
    %12 = vector.shape_cast %11 : vector<128x128xbf16> to vector<8x16x128xbf16>
    %c0_3 = arith.constant 0 : index
    %c0_4 = arith.constant 0 : index
    %c0_5 = arith.constant 0 : index
    %13 = vector.load %arg2[%c0_3, %c0_4, %c0_5] : memref<8x16x16xbf16, #tpu.memory_space<vmem>>, vector<8x16x16xbf16>
    "tpu.trace_start"() <{level = 10 : i32, message = "bij,bjh->bih"}> : () -> ()
    %cst_6 = arith.constant dense<0.000000e+00> : vector<8x16x128xf32>
    %14 = tpu.matmul %13, %12, %cst_6 {dimension_numbers = #tpu.dot_dimension_numbers<[2], [1], [1], [2], [0, 0, 0, 1, 1, 2], [0], [0]>} : vector<8x16x16xbf16>, vector<8x16x128xbf16>, vector<8x16x128xf32> -> vector<8x16x128xf32>
    "tpu.trace_stop"() : () -> ()
    %15 = arith.truncf %14 : vector<8x16x128xf32> to vector<8x16x128xbf16>
    %16 = vector.shape_cast %15 : vector<8x16x128xbf16> to vector<128x128xbf16>
    %c0_7 = arith.constant 0 : index
    %c0_8 = arith.constant 0 : index
    %17 = vector.load %arg5[%c0_7, %c0_8] : memref<128x128xbf16, #tpu.memory_space<vmem>>, vector<128x128xbf16>
    %cst_9 = arith.constant dense<0.000000e+00> : vector<128x128xf32>
    %18 = tpu.matmul %16, %17, %cst_9 {dimension_numbers = #tpu.dot_dimension_numbers<[1], [0], [0], [1], [0, 0, 1, 1], [], []>} : vector<128x128xbf16>, vector<128x128xbf16>, vector<128x128xf32> -> vector<128x128xf32>
    %c0_10 = arith.constant 0 : index
    %c0_11 = arith.constant 0 : index
    %19 = vector.load %arg6[%c0_10, %c0_11] : memref<1x128xf32, #tpu.memory_space<vmem>>, vector<1x128xf32>
    %20 = vector.broadcast %19 : vector<1x128xf32> to vector<128x128xf32>
    %21 = arith.addf %18, %20 : vector<128x128xf32>
    %cst_12 = arith.constant 0.000000e+00 : f32
    %22 = vector.broadcast %cst_12 : f32 to vector<128x128xf32>
    %23 = arith.maximumf %21, %22 : vector<128x128xf32>
    %24 = arith.truncf %23 : vector<128x128xf32> to vector<128x128xbf16>
    %25 = vector.shape_cast %24 : vector<128x128xbf16> to vector<8x16x128xbf16>
    "tpu.trace_start"() <{level = 10 : i32, message = "bij,bjh->bih"}> : () -> ()
    %cst_13 = arith.constant dense<0.000000e+00> : vector<8x16x128xf32>
    %26 = tpu.matmul %13, %25, %cst_13 {dimension_numbers = #tpu.dot_dimension_numbers<[2], [1], [1], [2], [0, 0, 0, 1, 1, 2], [0], [0]>} : vector<8x16x16xbf16>, vector<8x16x128xbf16>, vector<8x16x128xf32> -> vector<8x16x128xf32>
    "tpu.trace_stop"() : () -> ()
    %27 = arith.truncf %26 : vector<8x16x128xf32> to vector<8x16x128xbf16>
    %28 = vector.shape_cast %27 : vector<8x16x128xbf16> to vector<128x128xbf16>
    %c0_14 = arith.constant 0 : index
    %c0_15 = arith.constant 0 : index
    %29 = vector.load %arg7[%c0_14, %c0_15] : memref<128x128xbf16, #tpu.memory_space<vmem>>, vector<128x128xbf16>
    %cst_16 = arith.constant dense<0.000000e+00> : vector<128x128xf32>
    %30 = tpu.matmul %28, %29, %cst_16 {dimension_numbers = #tpu.dot_dimension_numbers<[1], [0], [0], [1], [0, 0, 1, 1], [], []>} : vector<128x128xbf16>, vector<128x128xbf16>, vector<128x128xf32> -> vector<128x128xf32>
    %c0_17 = arith.constant 0 : index
    %c0_18 = arith.constant 0 : index
    %31 = vector.load %arg8[%c0_17, %c0_18] : memref<1x128xf32, #tpu.memory_space<vmem>>, vector<1x128xf32>
    %32 = vector.broadcast %31 : vector<1x128xf32> to vector<128x128xf32>
    %33 = arith.addf %30, %32 : vector<128x128xf32>
    %34 = vector.shape_cast %33 : vector<128x128xf32> to vector<8x16x128xf32>
    %c0_19 = arith.constant 0 : index
    %c0_20 = arith.constant 0 : index
    %35 = vector.load %arg3[%c0_19, %c0_20] : memref<8x16xf32, #tpu.memory_space<vmem>>, vector<8x16xf32>
    %36 = vector.shape_cast %35 : vector<8x16xf32> to vector<8x16x1xf32>
    %37 = vector.broadcast %36 : vector<8x16x1xf32> to vector<8x16x128xf32>
    %38 = arith.mulf %37, %34 : vector<8x16x128xf32>
    %cst_21 = arith.constant dense<0.000000e+00> : vector<8x128xf32>
    %39 = vector.multi_reduction <add>, %38, %cst_21 [1] : vector<8x16x128xf32> to vector<8x128xf32>
    %c0_22 = arith.constant 0 : index
    %c0_23 = arith.constant 0 : index
    %40 = vector.load %arg9[%c0_22, %c0_23] : memref<8x128xf32, #tpu.memory_space<vmem>>, vector<8x128xf32>
    tpu.vector_store %arg9[%c0_22, %c0_23], %39 {strides = array<i32>} : memref<8x128xf32, #tpu.memory_space<vmem>>, vector<8x128xf32>,
    return
  }
  func.func @transform_0(%arg0: i32) -> (i32, i32) {
    %c0_i32 = arith.constant 0 : i32
    %c0_i32_0 = arith.constant 0 : i32
    return %arg0, %c0_i32 : i32, i32
  }
  func.func @transform_1(%arg0: i32) -> (i32, i32, i32) {
    %c0_i32 = arith.constant 0 : i32
    %c0_i32_0 = arith.constant 0 : i32
    %c0_i32_1 = arith.constant 0 : i32
    return %arg0, %c0_i32, %c0_i32_0 : i32, i32, i32
  }
  func.func @transform_2(%arg0: i32) -> (i32, i32) {
    %c0_i32 = arith.constant 0 : i32
    %c0_i32_0 = arith.constant 0 : i32
    return %arg0, %c0_i32 : i32, i32
  }
  func.func @transform_3(%arg0: i32) -> (i32, i32) {
    %c0_i32 = arith.constant 0 : i32
    %c0_i32_0 = arith.constant 0 : i32
    %c0_i32_1 = arith.constant 0 : i32
    return %c0_i32, %c0_i32_0 : i32, i32
  }
  func.func @transform_4(%arg0: i32) -> (i32, i32) {
    %c0_i32 = arith.constant 0 : i32
    %c0_i32_0 = arith.constant 0 : i32
    %c0_i32_1 = arith.constant 0 : i32
    return %c0_i32, %c0_i32_0 : i32, i32
  }
  func.func @transform_5(%arg0: i32) -> (i32, i32) {
    %c0_i32 = arith.constant 0 : i32
    %c0_i32_0 = arith.constant 0 : i32
    %c0_i32_1 = arith.constant 0 : i32
    return %c0_i32, %c0_i32_0 : i32, i32
  }
  func.func @transform_6(%arg0: i32) -> (i32, i32) {
    %c0_i32 = arith.constant 0 : i32
    %c0_i32_0 = arith.constant 0 : i32
    %c0_i32_1 = arith.constant 0 : i32
    return %c0_i32, %c0_i32_0 : i32, i32
  }
  func.func @transform_7(%arg0: i32) -> (i32, i32) {
    %c0_i32 = arith.constant 0 : i32
    %c0_i32_0 = arith.constant 0 : i32
    %c0_i32_1 = arith.constant 0 : i32
    return %c0_i32, %c0_i32_0 : i32, i32
  }
  func.func @transform_8(%arg0: i32) -> (i32, i32) {
    %c0_i32 = arith.constant 0 : i32
    %c0_i32_0 = arith.constant 0 : i32
    return %arg0, %c0_i32 : i32, i32
  }
}

</mosaic_0001>

<bundles_post_ra>
// kernel: tpu_custom_call.1
= control target key start
LH: loop header
LB: loop body
LE: loop exit
PB: predicated region body
PF: predicated region fallthrough
CT: control target
= control target key end

     0   :  { %s3473_s0 = inlined_call_operand.hbm [shape: s32[16,16], index: 0, kind: input, shape index: {}]   ;;  %s3474_s1 = inlined_call_operand.hbm [shape: bf16[16,16,16], index: 1, kind: input, shape index: {}]   ;;  %s3475_s2 = inlined_call_operand.hbm [shape: f32[16,16], index: 2, kind: input, shape index: {}]   ;;  %s3476_s3 = inlined_call_operand.hbm [shape: bf16[32,128], index: 3, kind: input, shape index: {}]   ;;  %s3477_s4 = inlined_call_operand.hbm [shape: bf16[128,128], index: 4, kind: input, shape index: {}]   ;;  %s3478_s5 = inlined_call_operand.vmem [shape: f32[1,128], index: 5, kind: input, shape index: {}]   ;;  %s3479_s6 = inlined_call_operand.hbm [shape: bf16[128,128], index: 6, kind: input, shape index: {}]   ;;  %s3480_s7 = inlined_call_operand.vmem [shape: f32[1,128], index: 7, kind: input, shape index: {}]   ;;  %s3481_s8 = inlined_call_operand.hbm [shape: f32[16,128], index: 8, kind: output, shape index: {}]  }
   0x1   :  { %3496 = sst [smem:[#allocation24_spill]] %s3474_s1 }
   0x2   :  { %3497 = sst [smem:[#allocation25_spill]] %s3476_s3 }
   0x3   :  { %3498 = sst [smem:[#allocation26_spill]] %s3477_s4 }
   0x4   :  { %13 = vsyncpa [#allocation3], 0 }
   0x5   :  { %15 = vsyncpa [#allocation3 + $0x1], 0 }
   0x6   :  { %16 = vsyncpa [#allocation6], 0 }
   0x7   :  { %18 = vsyncpa [#allocation6 + $0x1], 0 }
   0x8   :  { %19 = vsyncpa [#allocation9], 0 }
   0x9   :  { %20 = vsyncpa [#allocation12], 0 }
   0xa   :  { %21 = vsyncpa [#allocation4], 0 }
   0xb   :  { %23 = vsyncpa [#allocation4 + $0x1], 0  ;;  %s2956_s27 = smov 0   ;;  %s2958_s28 = smov 0  }
   0xc   :  { %s2960_s29 = smov 0   ;;  %s2962_s30 = smov 0  }
   0xd LB: > { %3499 = sst [smem:[#allocation19_spill]] %s2886_s27  ;;  %s2977_s9 = sadd.s32 4294967295, %s2898_s30   ;;  %s2898_s30 = sphi %s2962_s30, %s3530_s30   ;;  %s2894_s29 = sphi %s2960_s29, %s3532_s29   ;;  %s2890_s28 = sphi %s2958_s28, %s3534_s28   ;;  %s2886_s27 = sphi %s2956_s27, %s3533_s27  }
   0xe   : > { %3500 = sst [smem:[#allocation20_spill]] %s2894_s29  ;;  %s2189_s10 = sadd.s32 4294967294, %s2898_s30  }
   0xf   : > { %s2981_s11 = sadd.s32 1, %s2898_s30   ;;  %s36_s12 = sadd.s32 1, %s2894_s29 }
  0x10   : > { %3501 = sst [smem:[#allocation21_spill]] %s2981_s11  ;;  %s33_s13 = ssub.s32 %s2898_s30, %s2981_s11 }
  0x11   : > { %p43_p0 = scmp.ne.s32.totalorder %s2894_s29, %s2890_s28  ;;  %p34_p1 = scmp.eq.s32.totalorder %s33_s13, 0 }
  0x12   : > { %p44_p2 = scmp.eq.s32.totalorder %s2898_s30, 0  ;;  %p49_p3 = scmp.ne.s32.totalorder %s2890_s28, %s2886_s27 }
  0x13   : > { %p3482_p4 = scmp.eq.s32.totalorder %s2977_s9, 0  ;;  %p230_p7 = scmp.eq.s32.totalorder %s2977_s9, 1 }
  0x14   : > { %s2993_s14 = scalar_select %p34_p1, %s2894_s29, %s36_s12  }
  0x15   : > { %p2995_p5 = por %p44_p2, %p43_p0  ;;  %p3001_p6 = por %p3482_p4, %p49_p3 }
  0x16   : > { %3502 = sst [smem:[#allocation22_spill]] %s2993_s14  ;;  %p236_p8 = scmp.eq.s32.totalorder %s2189_s10, 1 }
  0x17   : > { %s3504_s16 = scalar_select %p3001_p6, 1, 0 }
  0x18   : > { %p2190_p9 = scmp.ge.s32.totalorder %s2898_s30, 1  ;;  %p243_p10 = scmp.lt.s32.totalorder %s2898_s30, 3 }
  0x19   : > { %p3008_p11 = por %p230_p7, %p43_p0  ;;  %p3012_p12 = por %p236_p8, %p49_p3 }
  0x1a   : > { %p3016_p13 = pnand %p2190_p9, %p243_p10  ;;  %s2900_s20 = smov [#allocation8]  }
  0x1b   : > { %s3505_s17 = scalar_select %p3008_p11, 1, 0 }
  0x1c   : > { %s3506_s18 = scalar_select %p3012_p12, 1, 0 }
  0x1d   : > { %s3508_s19 = scalar_select %p3016_p13, 1, 0 }
  0x1e   : > { %3507 = sst [smem:[#allocation23_spill]] %s3506_s18  ;;  %p2563_p1 = pneg %p3016_p13 }
  0x1f   : > { %s255_s21 = sshll.u32 %s2900_s20, 4  ;;  %p2590_p3 = scmp.lt.s32.totalorder %s2898_s30, 2  ;;  %s256_s21 = int_to_ptr.vmem [resolvable:$true] %s255_s21 }
  0x20   : > { %p3024_p2 = pnand %p2563_p1, %p3482_p4  ;;  %s3031_s23 = sand.u32 1, %s2894_s29  }
  0x21   : > { %s319_s24 = sand.u32 1, %s2898_s30   ;;  %s2671_s25 = scalar_lea.vmem %s256_s21, 256 }
  0x22   : > { %s3509_s22 = scalar_select %p3024_p2, 1, 0 }
  0x23   : > { %p3491_p7 = pneg %p3024_p2  ;;  %p2672_p8 = scmp.ne.s32.totalorder %s256_s21, %s2671_s25 }
  0x24   : > { %p2679_p12 = scmp.lt.s32.totalorder %s256_s21, %s256_s21  ;;  %p2680_p1 = scmp.lt.s32.totalorder %s2671_s25, %s2671_s25 }
  0x25   : > { %p2674_p9 = pnand %p2672_p8, %p3491_p7 }
  0x26   : > { %p2681_p4 = por %p2680_p1, %p2679_p12 }
  0x27   : > { %p2675_p10 = pneg %p2674_p9 }
  0x29   : > { %p2682_p11 = pnand %p2681_p4, %p2675_p10 }
  0x2b   : > { %2685 = shalt.err (!%p2682_p11)
}
  0x2c   : > { %s3489_s26 = smov 64   ;;  %s2902_s10 = smov 4  }
  0x2d   : > { %s3510_s3 = sld [smem:[#allocation25_spill]]  ;;  %p3051_p12 = pnand %p2590_p3, %p2995_p5 }
  0x2e   : > { %s2197_s25 = sshll.u32 %s3031_s23, 6  ;;  %s2284_s14 = sshll.u32 %s2898_s30, 10 }
  0x2f   : > { %s3512_s1 = sld [smem:[#allocation24_spill]]  ;;  %s323_s27 = scalar_lea.vmem [#allocation5], %s2197_s25 }
  0x30   : > { %s331_s12 = sshll.u32 %s323_s27, 4  ;;  %s3064_s15 = scalar_lea.sflag [#allocation6], %s319_s24  ;;  %s3062_s12 = int_to_ptr.vmem [resolvable:$true] %s331_s12 }
  0x31   : > { %p3070_p5 = pneg %p3051_p12 }
  0x33   : > { %2566 = dma.hbm_to_vmem [thread:$0]  (!%p3024_p2), %s3510_s3, 256, %s256_s21, [#allocation9], %s3489_s26, %s3489_s26, %s2902_s10  }
  0x35   : > { %s3060_s18 = scalar_lea.hbm %s3512_s1, %s2284_s14  ;;  %s2691_s14 = scalar_lea.hbm %s3512_s1, 2048 }
  0x36   : > { %s2686_s21 = scalar_lea.hbm %s3060_s18, 1024  ;;  %p2692_p8 = scmp.lt.s32.totalorder %s3060_s18, %s3512_s1 }
  0x37   : > { %p2687_p4 = scmp.ne.s32.totalorder %s3060_s18, %s2686_s21  ;;  %p2693_p9 = scmp.lt.s32.totalorder %s2691_s14, %s2686_s21 }
  0x39   : > { %p2689_p11 = pnand %p3070_p5, %p2687_p4  ;;  %p2694_p10 = por %p2693_p9, %p2692_p8 }
  0x3b   : > { %p2690_p3 = pneg %p2689_p11 }
  0x3d   : > { %p2695_p1 = pnand %p2694_p10, %p2690_p3 }
  0x3f   : > { %2698 = shalt.err (!%p2695_p1)
}
  0x40   : > { %s2699_s24 = scalar_lea.vmem %s3062_s12, 1024  ;;  %s2903_s26 = smov [#allocation5]  }
  0x41   : > { %p2700_p0 = scmp.ne.s32.totalorder %s3062_s12, %s2699_s24  ;;  %s2704_s29 = sshll.u32 %s2903_s26, 4  ;;  %s2705_s29 = int_to_ptr.vmem [resolvable:$false] %s2704_s29 }
  0x42   : > { %s2706_s11 = scalar_lea.vmem %s2705_s29, 2048  ;;  %p2707_p7 = scmp.lt.s32.totalorder %s3062_s12, %s2705_s29 }
  0x43   : > { %p2702_p4 = pnand %p2700_p0, %p3070_p5  ;;  %p2708_p6 = scmp.lt.s32.totalorder %s2706_s11, %s2699_s24 }
  0x45   : > { %p2703_p11 = pneg %p2702_p4  ;;  %p2709_p13 = por %p2708_p6, %p2707_p7 }
  0x47   : > { %p2710_p2 = pnand %p2709_p13, %p2703_p11 }
  0x49   : > { %2713 = shalt.err (!%p2710_p2)
}
  0x4a   : > { %s3514_s21 = smov 64   ;;  %s2904_s14 = smov [#allocation10]  }
  0x4b   : > { %2579 = dma.hbm_to_vmem [thread:$0]  (!%p3051_p12), %s3060_s18, 1024, %s3062_s12, %s3064_s15, %s3514_s21, %s3514_s21, %s2902_s10  }
  0x4c   : > { %s268_s27 = sshll.u32 %s2904_s14, 4  ;;  %s2905_s26 = smov [#allocation11]   ;;  %s269_s27 = int_to_ptr.vmem [resolvable:$true] %s268_s27 }
  0x4d   : > { %s284_s25 = sshll.u32 %s2905_s26, 4  ;;  %s2725_s29 = scalar_lea.vmem %s269_s27, 1024  ;;  %s285_s25 = int_to_ptr.vmem [resolvable:$true] %s284_s25 }
  0x4e   : > { %p2726_p0 = scmp.ne.s32.totalorder %s269_s27, %s2725_s29  ;;  %p3515_p6 = scmp.ne.s32.totalorder %s3509_s22, 0 }
  0x4f   : > { %p2733_p3 = scmp.lt.s32.totalorder %s269_s27, %s269_s27  ;;  %p2734_p8 = scmp.lt.s32.totalorder %s2725_s29, %s2725_s29 }
  0x50   : > { %p3516_p13 = pneg %p3515_p6 }
  0x51   : > { %p2735_p9 = por %p2734_p8, %p2733_p3 }
  0x52   : > { %p2728_p2 = pnand %p2726_p0, %p3516_p13 }
  0x54   : > { %p2729_p7 = pneg %p2728_p2 }
  0x56   : > { %p2736_p10 = pnand %p2735_p9, %p2729_p7 }
  0x58   : > { %2739 = shalt.err (!%p2736_p10)
}
  0x59   : > { %s3517_s4 = sld [smem:[#allocation26_spill]]  ;;  %s2751_s24 = scalar_lea.vmem %s285_s25, 1024 }
  0x5a   : > { %p2752_p1 = scmp.ne.s32.totalorder %s285_s25, %s2751_s24  ;;  %p3518_p4 = pmov %p3516_p13 }
  0x5b   : > { %p2759_p13 = scmp.lt.s32.totalorder %s285_s25, %s285_s25  ;;  %p2760_p2 = scmp.lt.s32.totalorder %s2751_s24, %s2751_s24 }
  0x5c   : > { %p2754_p11 = pnand %p2752_p1, %p3518_p4 }
  0x5d   : > { %p2761_p7 = por %p2760_p2, %p2759_p13 }
  0x5e   : > { %p2755_p0 = pneg %p2754_p11 }
  0x5f   : > { %2569 = dma.hbm_to_vmem [thread:$0]  (!%p3515_p6), %s3517_s4, 1024, %s269_s27, [#allocation9], %s3514_s21, %s3514_s21, %s2902_s10  }
  0x60   : > { %p2762_p3 = pnand %p2761_p7, %p2755_p0 }
  0x62   : > { %2765 = shalt.err (!%p2762_p3)
}
  0x63   : > { %2572 = dma.hbm_to_vmem [thread:$0]  (!%p3515_p6), %s3479_s6, 1024, %s285_s25, [#allocation12], %s3514_s21, %s3514_s21, %s2902_s10  }
  0x64   : > { %s2195_s27 = sshll.u32 %s3031_s23, 3  ;;  %s2196_s26 = sshll.u32 %s2898_s30, 7 }
  0x65   : > { %s3123_s12 = scalar_lea.hbm %s3473_s0, %s2196_s26  ;;  %s305_s22 = scalar_lea.vmem [#allocation2], %s2195_s27 }
  0x66   : > { %s312_s24 = sshll.u32 %s305_s22, 4  ;;  %s3130_s1 = scalar_lea.hbm %s3475_s2, %s2196_s26  ;;  %s313_s24 = int_to_ptr.vmem [resolvable:$true] %s312_s24 }
  0x67   : > { %s302_s10 = scalar_lea.sflag [#allocation3], %s3031_s23  ;;  %s2766_s21 = scalar_lea.hbm %s3123_s12, 128 }
  0x68   : > { %p2767_p6 = scmp.ne.s32.totalorder %s3123_s12, %s2766_s21  ;;  %s2771_s18 = scalar_lea.hbm %s3473_s0, 256 }
  0x69   : > { %p2772_p10 = scmp.lt.s32.totalorder %s3123_s12, %s3473_s0  ;;  %p2773_p1 = scmp.lt.s32.totalorder %s2771_s18, %s2766_s21 }
  0x6a   : > { %p2769_p8 = pnand %p2767_p6, %p3070_p5 }
  0x6b   : > { %p2774_p4 = por %p2773_p1, %p2772_p10 }
  0x6c   : > { %p2770_p9 = pneg %p2769_p8 }
  0x6e   : > { %p2775_p11 = pnand %p2774_p4, %p2770_p9 }
  0x70   : > { %2778 = shalt.err (!%p2775_p11)
}
  0x71   : > { %s2779_s26 = scalar_lea.vmem %s313_s24, 128  ;;  %s2906_s22 = smov [#allocation2]  }
  0x72   : > { %p2780_p0 = scmp.ne.s32.totalorder %s313_s24, %s2779_s26  ;;  %s2784_s11 = sshll.u32 %s2906_s22, 4  ;;  %s2785_s11 = int_to_ptr.vmem [resolvable:$false] %s2784_s11 }
  0x73   : > { %s2786_s14 = scalar_lea.vmem %s2785_s11, 256  ;;  %p2787_p7 = scmp.lt.s32.totalorder %s313_s24, %s2785_s11 }
  0x74   : > { %p2782_p13 = pnand %p2780_p0, %p3070_p5  ;;  %p2788_p3 = scmp.lt.s32.totalorder %s2786_s14, %s2779_s26 }
  0x76   : > { %p2783_p2 = pneg %p2782_p13  ;;  %p2789_p6 = por %p2788_p3, %p2787_p7 }
  0x78   : > { %p2790_p8 = pnand %p2789_p6, %p2783_p2 }
  0x7a   : > { %2793 = shalt.err (!%p2790_p8)
}
  0x7b   : > { %2576 = dma.hbm_to_vmem [thread:$0]  (!%p3051_p12), %s3123_s12, 128, %s313_s24, %s302_s10  }
  0x7c   : > { %s345_s3 = scalar_lea.vmem [#allocation7], %s2195_s27  ;;  %s2794_s21 = scalar_lea.hbm %s3130_s1, 128 }
  0x7d   : > { %s352_s4 = sshll.u32 %s345_s3, 4  ;;  %p2795_p9 = scmp.ne.s32.totalorder %s3130_s1, %s2794_s21  ;;  %s353_s4 = int_to_ptr.vmem [resolvable:$true] %s352_s4 }
  0x7e   : > { %s2799_s18 = scalar_lea.hbm %s3475_s2, 256  ;;  %p2800_p4 = scmp.lt.s32.totalorder %s3130_s1, %s3475_s2 }
  0x7f   : > { %p2797_p10 = pnand %p2795_p9, %p3070_p5  ;;  %p2801_p11 = scmp.lt.s32.totalorder %s2799_s18, %s2794_s21 }
  0x81   : > { %p2798_p1 = pneg %p2797_p10  ;;  %p2802_p0 = por %p2801_p11, %p2800_p4 }
  0x83   : > { %p2803_p13 = pnand %p2802_p0, %p2798_p1 }
  0x85   : > { %2806 = shalt.err (!%p2803_p13)
}
  0x86   : > { %s2807_s23 = scalar_lea.vmem %s353_s4, 128  ;;  %s2907_s27 = smov [#allocation7]  }
  0x87   : > { %p2808_p2 = scmp.ne.s32.totalorder %s353_s4, %s2807_s23  ;;  %s2812_s12 = sshll.u32 %s2907_s27, 4  ;;  %s2813_s12 = int_to_ptr.vmem [resolvable:$false] %s2812_s12 }
  0x88   : > { %s2814_s24 = scalar_lea.vmem %s2813_s12, 256  ;;  %p2815_p6 = scmp.lt.s32.totalorder %s353_s4, %s2813_s12 }
  0x89   : > { %p2810_p7 = pnand %p2808_p2, %p3070_p5  ;;  %p2816_p8 = scmp.lt.s32.totalorder %s2814_s24, %s2807_s23 }
  0x8b   : > { %p2811_p3 = pneg %p2810_p7  ;;  %p2817_p9 = por %p2816_p8, %p2815_p6 }
  0x8d   : > { %p2818_p10 = pnand %p2817_p9, %p2811_p3 }
  0x8f   : > { %2821 = shalt.err (!%p2818_p10)
}
  0x90   : > { %2582 = dma.hbm_to_vmem [thread:$0]  (!%p3051_p12), %s3130_s1, 128, %s353_s4, %s3064_s15  }
  0x91   : > { %p3519_p1 = scmp.ne.s32.totalorder %s3508_s19, 0 }
  0x92   : > { %s3171_s13 = sand.u32 (!%p3519_p1), 1, %s2890_s28   ;;  %p3520_p5 = scmp.ne.s32.totalorder (!%p3519_p1), %s3504_s16, 0 }
  0x93   : > { %361 = sbr.rel (%p3519_p1) target bundleno = 1394 (0x572), region = 52  ;;  %s3174_s10 = sshll.u32 (!%p3519_p1), %s3171_s13, 3 }
  0x94   : > { %s364_s11 = scalar_lea.sflag (!%p3519_p1), [#allocation3], %s3171_s13  ;;  %s367_s14 = scalar_lea.vmem (!%p3519_p1), [#allocation2], %s3174_s10 }
  0x98   : > { %2865 = dma.done.wait (%p3520_p5), %s364_s11, 128  }
  0x99   : > { %2867 = vsyncadd (%p3520_p5), %s364_s11, 4294967168  ;;  %s372_s1 = sand.u32 1, %s2977_s9   ;;  %s2205_s19 = sshll.u32 %s3171_s13, 6 }
  0x9a   : > { %s373_s20 = scalar_lea.sflag [#allocation6], %s372_s1  ;;  %s3184_s15 = scalar_lea.vmem [#allocation5], %s2205_s19 }
  0x9b   : > { %2869 = dma.done.wait (%p3520_p5), %s373_s20, 1152  }
  0x9c   : > { %2871 = vsyncadd (%p3520_p5), %s373_s20, 4294966144  ;;  %s385_s3 = scalar_lea.vmem [#allocation7], %s3174_s10  ;;  %p3521_p12 = scmp.eq.s32.totalorder %s2977_s9, 0 }
  0x9e   : > { %2873 = dma.done.wait (%p3521_p12), [#allocation9], 1280   ;;  %p3522_p4 = pmov %p3521_p12 }
  0xa0   : > { %2875 = vsyncadd (%p3522_p4), [#allocation9], 4294966016  ;;  %p3523_p11 = pmov %p3522_p4 }
  0xa1   : > { %p3524_p0 = pmov %p3522_p4 }
  0xa2   : > { %2877 = dma.done.wait (%p3523_p11), [#allocation12], 1024  }
  0xa3   : > { %2879 = vsyncadd (%p3524_p0), [#allocation12], 4294966272  ;;  %v443_v0 = vlaneseq  ;;  %v442_v6 = vld [vmem:[%s367_s14] sm:$0xff]  ;;  %v2908_v15 = vmov 0.0   ;;  %vm605_vm4 = vcmask 261120   ;;  %s2280_s29 = sshll.u32 %s2977_s9, 7 }
  0xa4   : > { %v2634_v11 = vld [vmem:[#allocation8 + $0x8] sm:$0xff]   ;;  %v2635_v13 = vld [vmem:[#allocation8] sm:$0xff]   ;;  %s439_s18 = scalar_lea.vmem [#allocation13], %s3174_s10  ;;  %s3436_s27 = scalar_lea.hbm %s3481_s8, %s2280_s29 }
  0xa5   : > { %v3199_v1 = vshrl.u32 %v443_v0, 7  ;;  %2359 = vmatprep.subr.bf16.mxu0 %v2634_v11  ;;  %2539 = vmatprep.subr.bf16.mxu1 %v2634_v11  ;;  %v3227_v22 = vand.u32 127, %v443_v0  ;;  %s2047_s26 = sshll.u32 %s439_s18, 4  ;;  %s2034_s12 = scalar_lea.sflag [#allocation4], %s3171_s13  ;;  %s2048_s26 = int_to_ptr.vmem [resolvable:$true] %s2047_s26 }
  0xa6   : > { %2360 = vmatpush3.bf16.msra.mxu0 %v2634_v11  ;;  %2541 = vmatpush3.bf16.msra.mxu1 %v2634_v11  ;;  %s2822_s24 = scalar_lea.vmem %s2048_s26, 128  ;;  %p3525_p2 = scmp.ne.s32.totalorder %s3505_s17, 0 }
  0xa7   : > { %v458_v2 = vsub.s32 1, %v3199_v1  ;;  %v447_v3 = vsub.s32 0, %v3199_v1  ;;  %v469_v4 = vsub.s32 2, %v3199_v1  ;;  %v480_v5 = vsub.s32 3, %v3199_v1  ;;  %2361 = vmatprep.subr.bf16.mxu0 %v2635_v13  ;;  %2540 = vmatprep.subr.bf16.mxu1 %v2635_v13  ;;  %p2823_p13 = scmp.ne.s32.totalorder %s2048_s26, %s2822_s24  ;;  %s2910_s9 = smov [#allocation13]  }
  0xa8   : > { %v491_v7 = vsub.s32 4, %v3199_v1  ;;  %v502_v10 = vsub.s32 5, %v3199_v1  ;;  %v513_v12 = vsub.s32 6, %v3199_v1  ;;  %v524_v20 = vsub.s32 7, %v3199_v1  ;;  %s2826_s10 = sshll.u32 %s2910_s9, 4  ;;  %s2827_s10 = int_to_ptr.vmem [resolvable:$false] %s2826_s10 }
  0xa9   : > { %v459_v8 = vrot.slane %v442_v6, %v458_v2  ;;  %v448_v9 = vrot.slane %v442_v6, %v447_v3  ;;  %v470_v14 = vrot.slane %v442_v6, %v469_v4  ;;  %v481_v16 = vrot.slane %v442_v6, %v480_v5  ;;  %p2824_p7 = pnand %p2823_p13, %p3525_p2  ;;  %s2828_s11 = scalar_lea.vmem %s2827_s10, 256 }
  0xaa   : > { %2362 = vmatpush3.bf16.msra.mxu0 %v2635_v13  ;;  %2542 = vmatpush3.bf16.msra.mxu1 %v2635_v13  ;;  %v492_v17 = vrot.slane %v442_v6, %v491_v7  ;;  %v503_v18 = vrot.slane %v442_v6, %v502_v10  ;;  %v514_v19 = vrot.slane %v442_v6, %v513_v12  ;;  %v3274_v13 = vld [vmem:[%s3184_s15] sm:$0xff]   ;;  %p2829_p6 = scmp.lt.s32.totalorder %s2048_s26, %s2827_s10  ;;  %p2830_p8 = scmp.lt.s32.totalorder %s2828_s11, %s2822_s24 }
  0xab   : > { %461 = vbcast.lane.b32.xlu1 %v459_v8, 256  ;;  %450 = vbcast.lane.b32.xlu0 %v448_v9, 256  ;;  %v525_v21 = vrot.slane %v442_v6, %v524_v20  ;;  %p2825_p3 = pneg %p2824_p7 }
  0xac   : > { %2379 = vmatprep.subr.bf16.mxu1 %v2908_v15  ;;  %2409 = vmatprep.subr.bf16.mxu0 %v2908_v15  ;;  %p2831_p9 = por %p2830_p8, %p2829_p6 }
  0xae   : > { %p2832_p10 = pnand %p2831_p9, %p2825_p3 }
  0xaf   : > { %465 = vbcast.lane.b32.xlu1 %v459_v8, 264  ;;  %454 = vbcast.lane.b32.xlu0 %v448_v9, 264 }
  0xb3   : > { %476 = vbcast.lane.b32.xlu1 %v470_v14, 264  ;;  %472 = vbcast.lane.b32.xlu0 %v470_v14, 256 }
  0xb7   : > { %487 = vbcast.lane.b32.xlu1 %v481_v16, 264  ;;  %483 = vbcast.lane.b32.xlu0 %v481_v16, 256 }
  0xbb   : > { %498 = vbcast.lane.b32.xlu1 %v492_v17, 264  ;;  %494 = vbcast.lane.b32.xlu0 %v492_v17, 256 }
  0xbf   : > { %509 = vbcast.lane.b32.xlu1 %v503_v18, 264  ;;  %505 = vbcast.lane.b32.xlu0 %v503_v18, 256 }
  0xc3   : > { %520 = vbcast.lane.b32.xlu1 %v514_v19, 264  ;;  %516 = vbcast.lane.b32.xlu0 %v514_v19, 256 }
  0xc7   : > { %531 = vbcast.lane.b32.xlu1 %v525_v21, 264  ;;  %527 = vbcast.lane.b32.xlu0 %v525_v21, 256  ;;  %v3283_v21 = vld [vmem:[%s3184_s15 + $0x8] sm:$0xff]  }
 0x11d   : > { %v462_v23 = vpop.permute.xlu1 %461  ;;  %v451_v24 = vpop.permute.xlu0 %450 }
 0x11e   : > { %vm535_vm0 = vcmp.eq.s32.totalorder %v462_v23, %v3227_v22  ;;  %vm533_vm1 = vcmp.eq.s32.totalorder %v451_v24, %v3227_v22 }
 0x11f   : > { %v2213_v27 = vsel %vm535_vm0, 1.0, %v2908_v15  ;;  %v2211_v28 = vsel %vm533_vm1, 1.0, %v2908_v15  ;;  %vm2909_vm1 = vmmov 0  }
 0x121   : > { %v466_v25 = vpop.permute.xlu1 %465  ;;  %v455_v26 = vpop.permute.xlu0 %454 }
 0x122   : > { %vm536_vm2 = vcmp.eq.s32.totalorder %v466_v25, %v3227_v22  ;;  %vm534_vm3 = vcmp.eq.s32.totalorder %v455_v26, %v3227_v22 }
 0x123   : > { %v2214_v29 = vsel %vm536_vm2, 1.0, %v2908_v15  ;;  %v2212_v30 = vsel %vm534_vm3, 1.0, %v2908_v15  ;;  %vm756_vm2 = vcmask 130048   ;;  %vm2017_vm3 = vcmask 1041409  }
 0x124   : > { %v582_v31 = vpack.c.bf16 %v2214_v29, %v2213_v27  ;;  %v581_v32 = vpack.c.bf16 %v2212_v30, %v2211_v28  ;;  %v3290_v27 = vld [vmem:[%s3184_s15 + $0x28] sm:$0xff]   ;;  %v3295_v29 = vld [vmem:[%s3184_s15 + $0x10] sm:$0xff]  }
 0x125   : > { %v477_v33 = vpop.permute.xlu1 %476  ;;  %v473_v34 = vpop.permute.xlu0 %472 }
 0x126   : > { %2363 = vmatprep.mubr.msk.bf16.mxu0 %vm605_vm4, %v581_v32  ;;  %vm538_vm5 = vcmp.eq.s32.totalorder %v477_v33, %v3227_v22  ;;  %vm537_vm6 = vcmp.eq.s32.totalorder %v473_v34, %v3227_v22  ;;  %v3306_v34 = vld [vmem:[%s3184_s15 + $0x38] sm:$0xff]  }
 0x127   : > { %2364 = vmatmul.mubr.msk.bf16.vlgmr.msra.gmra.mxu0 %vm605_vm4, %v582_v31  ;;  %v2216_v35 = vsel %vm538_vm5, 1.0, %v2908_v15  ;;  %v2215_v36 = vsel %vm537_vm6, 1.0, %v2908_v15  ;;  %vm2021_vm5 = vcmask 1043459   ;;  %vm2023_vm6 = vcmask 1044484  }
 0x128   : > { %v583_v37 = vpack.c.bf16 %v2216_v35, %v2215_v36  ;;  %2411 = vmatprep.mubr.msk.bf16.mxu0 %vm2909_vm1, %v2908_v15  ;;  %v3311_v35 = vld [vmem:[%s3184_s15 + $0x18] sm:$0xff]  }
 0x129   : > { %v488_v38 = vpop.permute.xlu1 %487  ;;  %v484_v39 = vpop.permute.xlu0 %483 }
 0x12a   : > { %vm540_vm7 = vcmp.eq.s32.totalorder %v488_v38, %v3227_v22  ;;  %vm539_vm8 = vcmp.eq.s32.totalorder %v484_v39, %v3227_v22  ;;  %2367 = vmatprep.mubr.msk.bf16.mxu1 %vm605_vm4, %v583_v37  ;;  %v3323_v38 = vld [vmem:[%s3184_s15 + $0x20] sm:$0xff]  }
 0x12b   : > { %v2218_v40 = vsel %vm540_vm7, 1.0, %v2908_v15  ;;  %v2217_v41 = vsel %vm539_vm8, 1.0, %v2908_v15  ;;  %vm2025_vm7 = vcmask 1045509   ;;  %vm2027_vm8 = vcmask 1046534  }
 0x12c   : > { %v584_v42 = vpack.c.bf16 %v2218_v40, %v2217_v41  ;;  %v2644_v40 = vld [vmem:[#allocation10 + $0x38] sm:$0xff]   ;;  %v3330_v41 = vld [vmem:[%s3184_s15 + $0x30] sm:$0xff]  }
 0x12d   : > { %v499_v43 = vpop.permute.xlu1 %498  ;;  %v495_v44 = vpop.permute.xlu0 %494 }
 0x12e   : > { %2368 = vmatmul.mubr.msk.bf16.vlgmr.msra.gmra.mxu1 %vm605_vm4, %v584_v42  ;;  %vm542_vm9 = vcmp.eq.s32.totalorder %v499_v43, %v3227_v22  ;;  %vm541_vm10 = vcmp.eq.s32.totalorder %v495_v44, %v3227_v22  ;;  %v2645_v42 = vld [vmem:[#allocation10 + $0x30] sm:$0xff]   ;;  %v2646_v43 = vld [vmem:[#allocation10 + $0x28] sm:$0xff]   ;;  %v2647_v44 = vld [vmem:[#allocation10 + $0x20] sm:$0xff]  }
 0x12f   : > { %v2220_v45 = vsel %vm542_vm9, 1.0, %v2908_v15  ;;  %v2219_v46 = vsel %vm541_vm10, 1.0, %v2908_v15  ;;  %vm2029_vm9 = vcmask 1047559  }
 0x130   : > { %v585_v47 = vpack.c.bf16 %v2220_v45, %v2219_v46  ;;  %v2648_v45 = vld [vmem:[#allocation10 + $0x18] sm:$0xff]   ;;  %v2649_v46 = vld [vmem:[#allocation10 + $0x10] sm:$0xff]  }
 0x131   : > { %v510_v48 = vpop.permute.xlu1 %509  ;;  %v506_v49 = vpop.permute.xlu0 %505 }
 0x132   : > { %vm544_vm11 = vcmp.eq.s32.totalorder %v510_v48, %v3227_v22  ;;  %vm543_vm12 = vcmp.eq.s32.totalorder %v506_v49, %v3227_v22  ;;  %2371 = vmatprep.mubr.msk.bf16.mxu1 %vm605_vm4, %v585_v47  ;;  %v2650_v47 = vld [vmem:[#allocation10 + $0x8] sm:$0xff]   ;;  %v2651_v48 = vld [vmem:[#allocation10] sm:$0xff]  }
 0x133   : > { %v2222_v50 = vsel %vm544_vm11, 1.0, %v2908_v15  ;;  %v2221_v51 = vsel %vm543_vm12, 1.0, %v2908_v15 }
 0x134   : > { %v586_v52 = vpack.c.bf16 %v2222_v50, %v2221_v51 }
 0x135   : > { %v521_v53 = vpop.permute.xlu1 %520  ;;  %v517_v54 = vpop.permute.xlu0 %516 }
 0x136   : > { %vm546_vm13 = vcmp.eq.s32.totalorder %v521_v53, %v3227_v22  ;;  %vm545_vm14 = vcmp.eq.s32.totalorder %v517_v54, %v3227_v22  ;;  %2372 = vmatmul.mubr.msk.bf16.gmra.mxu1 %vm605_vm4, %v586_v52 }
 0x137   : > { %v2224_v55 = vsel %vm546_vm13, 1.0, %v2908_v15  ;;  %v2223_v56 = vsel %vm545_vm14, 1.0, %v2908_v15 }
 0x138   : > { %v587_v57 = vpack.c.bf16 %v2224_v55, %v2223_v56 }
 0x139   : > { %v532_v58 = vpop.permute.xlu1 %531  ;;  %v528_v59 = vpop.permute.xlu0 %527 }
 0x13a   : > { %vm548_vm15 = vcmp.eq.s32.totalorder %v532_v58, %v3227_v22  ;;  %vm547_vm0 = vcmp.eq.s32.totalorder %v528_v59, %v3227_v22  ;;  %2375 = vmatprep.mubr.msk.bf16.mxu1 %vm605_vm4, %v587_v57 }
 0x13b   : > { %v2226_v60 = vsel %vm548_vm15, 1.0, %v2908_v15  ;;  %v2225_v61 = vsel %vm547_vm0, 1.0, %v2908_v15 }
 0x13c   : > { %v588_v62 = vpack.c.bf16 %v2226_v60, %v2225_v61 }
 0x13e   : > { %2376 = vmatmul.mubr.msk.bf16.gmra.mxu1 %vm605_vm4, %v588_v62  ;;  %vm2019_vm4 = vcmask 1042434  }
 0x13f   : > { %2381 = vmatprep.mubr.msk.bf16.mxu1 %vm2909_vm1, %v2908_v15 }
 0x1e7   : > { %v2365_v63 = vpop.f32.mrf.mxu0 }
 0x1e9   : > { %v664_v0 = vpop.f32.mrf.mxu0 }
 0x1eb   : > { %v2366_v6 = vpop.f32.mrf.mxu0 }
 0x1ec   : > { %v728_v16 = vpack.c.bf16 %v2366_v6, %v2365_v63 }
 0x1ed   : > { %v667_v8 = vpop.f32.mrf.mxu0 }
 0x1ee   : > { %v727_v9 = vpack.c.bf16 %v667_v8, %v664_v0  ;;  %v2369_v11 = vpop.f32.mrf.mxu1 }
 0x1f0   : > { %2380 = vmatpush3.bf16.msra.mxu1 %v727_v9  ;;  %v680_v14 = vpop.f32.mrf.mxu1 }
 0x1f1   : > { %2385 = vmatprep.subr.bf16.mxu1 %v2908_v15 }
 0x1f2   : > { %v2370_v17 = vpop.f32.mrf.mxu1 }
 0x1f3   : > { %2382 = vmatmul.mubr.msk.bf16.vlgmr.msra.gmra.mxu1 %vm756_vm2, %v3274_v13  ;;  %v730_v31 = vpack.c.bf16 %v2370_v17, %v2369_v11 }
 0x1f4   : > { %2386 = vmatpush3.bf16.msra.mxu1 %v728_v16  ;;  %2387 = vmatprep.mubr.msk.bf16.mxu1 %vm2909_vm1, %v2908_v15  ;;  %v683_v18 = vpop.f32.mrf.mxu1 }
 0x1f5   : > { %2391 = vmatprep.subr.bf16.mxu1 %v2908_v15  ;;  %v729_v22 = vpack.c.bf16 %v683_v18, %v680_v14 }
 0x1f6   : > { %v2373_v19 = vpop.f32.mrf.mxu1 }
 0x1f8   : > { %v696_v23 = vpop.f32.mrf.mxu1 }
 0x1fa   : > { %v2374_v24 = vpop.f32.mrf.mxu1 }
 0x1fb   : > { %2388 = vmatmul.mubr.msk.bf16.vlgmr.msra.gmra.mxu1 %vm756_vm2, %v3283_v21  ;;  %v732_v25 = vpack.c.bf16 %v2374_v24, %v2373_v19 }
 0x1fc   : > { %2392 = vmatpush3.bf16.msra.mxu1 %v729_v22  ;;  %2393 = vmatprep.mubr.msk.bf16.mxu1 %vm2909_vm1, %v2908_v15  ;;  %v699_v26 = vpop.f32.mrf.mxu1 }
 0x1fd   : > { %2397 = vmatprep.subr.bf16.mxu1 %v2908_v15  ;;  %2410 = vmatpush3.bf16.msra.mxu0 %v732_v25  ;;  %v731_v36 = vpack.c.bf16 %v699_v26, %v696_v23 }
 0x1fe   : > { %v2377_v28 = vpop.f32.mrf.mxu1  ;;  %2421 = vmatprep.subr.bf16.mxu0 %v2908_v15 }
 0x200   : > { %v712_v30 = vpop.f32.mrf.mxu1  ;;  %2412 = vmatmul.mubr.msk.bf16.vlgmr.msra.gmra.mxu0 %vm756_vm2, %v3290_v27 }
 0x201   : > { %2423 = vmatprep.mubr.msk.bf16.mxu0 %vm2909_vm1, %v2908_v15 }
 0x202   : > { %v2378_v32 = vpop.f32.mrf.mxu1 }
 0x203   : > { %2394 = vmatmul.mubr.msk.bf16.vlgmr.msra.gmra.mxu1 %vm756_vm2, %v3295_v29  ;;  %v734_v33 = vpack.c.bf16 %v2378_v32, %v2377_v28 }
 0x204   : > { %2398 = vmatpush3.bf16.msra.mxu1 %v730_v31  ;;  %2399 = vmatprep.mubr.msk.bf16.mxu1 %vm2909_vm1, %v2908_v15  ;;  %v715_v37 = vpop.f32.mrf.mxu1 }
 0x205   : > { %2403 = vmatprep.subr.bf16.mxu1 %v2908_v15  ;;  %2422 = vmatpush3.bf16.msra.mxu0 %v734_v33  ;;  %v733_v39 = vpack.c.bf16 %v715_v37, %v712_v30 }
 0x206   : > { %2459 = vmatprep.subr.bf16.mxu0 %v2908_v15 }
 0x208   : > { %2424 = vmatmul.mubr.msk.bf16.vlgmr.msra.gmra.mxu0 %vm756_vm2, %v3306_v34 }
 0x209   : > { %2461 = vmatprep.mubr.msk.bf16.mxu0 %vm2909_vm1, %v2908_v15 }
 0x20b   : > { %2400 = vmatmul.mubr.msk.bf16.vlgmr.msra.gmra.mxu1 %vm756_vm2, %v3311_v35 }
 0x20c   : > { %2404 = vmatpush3.bf16.msra.mxu1 %v731_v36  ;;  %2405 = vmatprep.mubr.msk.bf16.mxu1 %vm2909_vm1, %v2908_v15 }
 0x20d   : > { %2415 = vmatprep.subr.bf16.mxu1 %v2908_v15 }
 0x213   : > { %2406 = vmatmul.mubr.msk.bf16.vlgmr.msra.gmra.mxu1 %vm756_vm2, %v3323_v38 }
 0x214   : > { %2416 = vmatpush3.bf16.msra.mxu1 %v733_v39  ;;  %2417 = vmatprep.mubr.msk.bf16.mxu1 %vm2909_vm1, %v2908_v15 }
 0x215   : > { %2427 = vmatprep.subr.bf16.mxu1 %v2644_v40 }
 0x21b   : > { %2418 = vmatmul.mubr.msk.bf16.vlgmr.msra.gmra.mxu1 %vm756_vm2, %v3330_v41 }
 0x21c   : > { %2428 = vmatpush3.bf16.msra.mxu1 %v2644_v40 }
 0x21d   : > { %2429 = vmatprep.subr.bf16.mxu1 %v2645_v42 }
 0x220   : > { %2430 = vmatpush3.bf16.msra.mxu1 %v2645_v42 }
 0x221   : > { %2431 = vmatprep.subr.bf16.mxu1 %v2646_v43 }
 0x224   : > { %2432 = vmatpush3.bf16.msra.mxu1 %v2646_v43 }
 0x225   : > { %2433 = vmatprep.subr.bf16.mxu1 %v2647_v44 }
 0x228   : > { %2434 = vmatpush3.bf16.msra.mxu1 %v2647_v44 }
 0x229   : > { %2435 = vmatprep.subr.bf16.mxu1 %v2648_v45 }
 0x22c   : > { %2436 = vmatpush3.bf16.msra.mxu1 %v2648_v45  ;;  %v3340_v45 = vld [vmem:[%s3478_s5] ss:$0 sm:$0xff] }
 0x22d   : > { %2437 = vmatprep.subr.bf16.mxu1 %v2649_v46 }
 0x230   : > { %2438 = vmatpush3.bf16.msra.mxu1 %v2649_v46 }
 0x231   : > { %2439 = vmatprep.subr.bf16.mxu1 %v2650_v47 }
 0x234   : > { %2440 = vmatpush3.bf16.msra.mxu1 %v2650_v47 }
 0x235   : > { %2441 = vmatprep.subr.bf16.mxu1 %v2651_v48 }
 0x238   : > { %2442 = vmatpush3.bf16.msra.mxu1 %v2651_v48 }
 0x239   : > { %2501 = vmatprep.subr.bf16.mxu1 %v2908_v15 }
 0x2b3   : > { %v794_v49 = vpop.f32.mrf.mxu1 }
 0x2b5   : > { %v2383_v50 = vpop.f32.mrf.mxu1 }
 0x2b7   : > { %v797_v51 = vpop.f32.mrf.mxu1 }
 0x2b8   : > { %v1144_v52 = vpack.c.bf16 %v797_v51, %v794_v49 }
 0x2b9   : > { %v2384_v53 = vpop.f32.mrf.mxu1 }
 0x2ba   : > { %2443 = vmatprep.mubr.bf16.mxu1 %v1144_v52 }
 0x2bb   : > { %v843_v54 = vpop.f32.mrf.mxu1 }
 0x2bd   : > { %v2389_v55 = vpop.f32.mrf.mxu1 }
 0x2bf   : > { %v846_v56 = vpop.f32.mrf.mxu1 }
 0x2c0   : > { %v1145_v57 = vpack.c.bf16 %v846_v56, %v843_v54  ;;  %v1039_v58 = vpop.f32.mrf.mxu0 }
 0x2c1   : > { %v2390_v59 = vpop.f32.mrf.mxu1 }
 0x2c2   : > { %2444 = vmatmul.mubr.bf16.vlgmr.msra.gmra.mxu1 %v1145_v57  ;;  %v2413_v60 = vpop.f32.mrf.mxu0 }
 0x2c3   : > { %v892_v61 = vpop.f32.mrf.mxu1 }
 0x2c4   : > { %v1042_v62 = vpop.f32.mrf.mxu0 }
 0x2c5   : > { %v2395_v63 = vpop.f32.mrf.mxu1  ;;  %v1149_v30 = vpack.c.bf16 %v1042_v62, %v1039_v58 }
 0x2c6   : > { %v2414_v0 = vpop.f32.mrf.mxu0 }
 0x2c7   : > { %v895_v6 = vpop.f32.mrf.mxu1 }
 0x2c8   : > { %v1146_v8 = vpack.c.bf16 %v895_v6, %v892_v61  ;;  %v1137_v9 = vpop.f32.mrf.mxu0 }
 0x2c9   : > { %v2396_v11 = vpop.f32.mrf.mxu1 }
 0x2ca   : > { %2447 = vmatprep.mubr.bf16.mxu1 %v1146_v8  ;;  %v2425_v14 = vpop.f32.mrf.mxu0 }
 0x2cb   : > { %v941_v16 = vpop.f32.mrf.mxu1 }
 0x2cc   : > { %v1140_v17 = vpop.f32.mrf.mxu0 }
 0x2cd   : > { %v2401_v18 = vpop.f32.mrf.mxu1  ;;  %v1151_v39 = vpack.c.bf16 %v1140_v17, %v1137_v9 }
 0x2ce   : > { %v2426_v19 = vpop.f32.mrf.mxu0 }
 0x2cf   : > { %v944_v22 = vpop.f32.mrf.mxu1 }
 0x2d0   : > { %v1147_v23 = vpack.c.bf16 %v944_v22, %v941_v16 }
 0x2d1   : > { %v2402_v24 = vpop.f32.mrf.mxu1 }
 0x2d2   : > { %2448 = vmatmul.mubr.bf16.gmra.mxu1 %v1147_v23 }
 0x2d3   : > { %v990_v25 = vpop.f32.mrf.mxu1 }
 0x2d5   : > { %v2407_v26 = vpop.f32.mrf.mxu1 }
 0x2d7   : > { %v993_v28 = vpop.f32.mrf.mxu1 }
 0x2d8   : > { %v1148_v31 = vpack.c.bf16 %v993_v28, %v990_v25 }
 0x2d9   : > { %v2408_v32 = vpop.f32.mrf.mxu1 }
 0x2da   : > { %2451 = vmatprep.mubr.bf16.mxu1 %v1148_v31 }
 0x2db   : > { %v1088_v33 = vpop.f32.mrf.mxu1  ;;  %2452 = vmatmul.mubr.bf16.gmra.mxu1 %v1149_v30 }
 0x2dd   : > { %v2419_v36 = vpop.f32.mrf.mxu1 }
 0x2df   : > { %v1091_v37 = vpop.f32.mrf.mxu1 }
 0x2e0   : > { %v1150_v40 = vpack.c.bf16 %v1091_v37, %v1088_v33 }
 0x2e1   : > { %v2420_v42 = vpop.f32.mrf.mxu1 }
 0x2e2   : > { %2455 = vmatprep.mubr.bf16.mxu1 %v1150_v40 }
 0x2e3   : > { %2456 = vmatmul.mubr.bf16.gmra.mxu1 %v1151_v39 }
 0x2e4   : > { %2503 = vmatprep.mubr.msk.bf16.mxu1 %vm2909_vm1, %v2908_v15 }
 0x382   : > { %v2445_v43 = vpop.f32.mrf.mxu1 }
 0x383   : > { %v1266_v51 = vadd.f32 %v2445_v43, %v3340_v45 }
 0x384   : > { %v1257_v44 = vpop.f32.mrf.mxu1 }
 0x385   : > { %v1258_v47 = vadd.f32 %v3340_v45, %v1257_v44  ;;  %v1322_v56 = vmax.f32 %v1266_v51, 0.0 }
 0x386   : > { %v2446_v46 = vpop.f32.mrf.mxu1 }
 0x387   : > { %v1269_v49 = vadd.f32 %v2446_v46, %v3340_v45  ;;  %v1320_v52 = vmax.f32 %v1258_v47, 0.0 }
 0x388   : > { %v1260_v48 = vpop.f32.mrf.mxu1 }
 0x389   : > { %v1261_v50 = vadd.f32 %v3340_v45, %v1260_v48  ;;  %v1323_v54 = vmax.f32 %v1269_v49, 0.0 }
 0x38b   : > { %v1321_v53 = vmax.f32 %v1261_v50, 0.0  ;;  %v1337_v57 = vpack.c.bf16 %v1323_v54, %v1322_v56  ;;  %v2652_v50 = vld [vmem:[#allocation11 + $0x38] sm:$0xff]  }
 0x38d   : > { %v1336_v55 = vpack.c.bf16 %v1321_v53, %v1320_v52  ;;  %v2657_v52 = vld [vmem:[#allocation11 + $0x10] sm:$0xff]   ;;  %v1848_v53 = vld [vmem:[%s385_s3] sm:$0xff] }
 0x38e   : > { %v1852_v54 = vrot.slane %v1848_v53, %v447_v3  ;;  %v1874_v56 = vrot.slane %v1848_v53, %v469_v4  ;;  %v1896_v3 = vrot.slane %v1848_v53, %v491_v7  ;;  %v1918_v4 = vrot.slane %v1848_v53, %v513_v12 }
 0x38f   : > { %2460 = vmatpush3.bf16.msra.mxu0 %v1336_v55  ;;  %v1863_v55 = vrot.slane %v1848_v53, %v458_v2  ;;  %v1907_v2 = vrot.slane %v1848_v53, %v502_v10 }
 0x390   : > { %2465 = vmatprep.subr.bf16.mxu0 %v2908_v15  ;;  %1858 = vbcast.lane.b32.xlu1 %v1852_v54, 264 }
 0x391   : > { %1854 = vbcast.lane.b32.xlu0 %v1852_v54, 256 }
 0x392   : > { %v2449_v58 = vpop.f32.mrf.mxu1  ;;  %2462 = vmatmul.mubr.msk.bf16.vlgmr.msra.gmra.mxu0 %vm756_vm2, %v3274_v13 }
 0x393   : > { %2466 = vmatpush3.bf16.msra.mxu0 %v1337_v57  ;;  %2467 = vmatprep.mubr.msk.bf16.mxu0 %vm2909_vm1, %v2908_v15  ;;  %v1282_v13 = vadd.f32 %v2449_v58, %v3340_v45  ;;  %v1885_v57 = vrot.slane %v1848_v53, %v480_v5  ;;  %v1929_v5 = vrot.slane %v1848_v53, %v524_v20 }
 0x394   : > { %v1273_v59 = vpop.f32.mrf.mxu1  ;;  %2471 = vmatprep.subr.bf16.mxu0 %v2908_v15  ;;  %1869 = vbcast.lane.b32.xlu1 %v1863_v55, 264 }
 0x395   : > { %v1274_v61 = vadd.f32 %v3340_v45, %v1273_v59  ;;  %v1326_v17 = vmax.f32 %v1282_v13, 0.0  ;;  %1865 = vbcast.lane.b32.xlu0 %v1863_v55, 256 }
 0x396   : > { %v2450_v60 = vpop.f32.mrf.mxu1 }
 0x397   : > { %v1285_v63 = vadd.f32 %v2450_v60, %v3340_v45  ;;  %v1324_v6 = vmax.f32 %v1274_v61, 0.0 }
 0x398   : > { %v1276_v62 = vpop.f32.mrf.mxu1  ;;  %1880 = vbcast.lane.b32.xlu1 %v1874_v56, 264 }
 0x399   : > { %v1277_v0 = vadd.f32 %v3340_v45, %v1276_v62  ;;  %v1327_v11 = vmax.f32 %v1285_v63, 0.0  ;;  %1876 = vbcast.lane.b32.xlu0 %v1874_v56, 256 }
 0x39a   : > { %2468 = vmatmul.mubr.msk.bf16.vlgmr.msra.gmra.mxu0 %vm756_vm2, %v3283_v21 }
 0x39b   : > { %v1325_v8 = vmax.f32 %v1277_v0, 0.0  ;;  %v2453_v9 = vpop.f32.mrf.mxu1  ;;  %2473 = vmatprep.mubr.msk.bf16.mxu0 %vm2909_vm1, %v2908_v15  ;;  %v1339_v19 = vpack.c.bf16 %v1327_v11, %v1326_v17 }
 0x39c   : > { %1891 = vbcast.lane.b32.xlu1 %v1885_v57, 264 }
 0x39d   : > { %v1338_v14 = vpack.c.bf16 %v1325_v8, %v1324_v6  ;;  %v1289_v16 = vpop.f32.mrf.mxu1  ;;  %1887 = vbcast.lane.b32.xlu0 %v1885_v57, 256 }
 0x39e   : > { %v1290_v23 = vadd.f32 %v3340_v45, %v1289_v16 }
 0x39f   : > { %v2454_v18 = vpop.f32.mrf.mxu1  ;;  %2472 = vmatpush3.bf16.msra.mxu0 %v1338_v14 }
 0x3a0   : > { %2477 = vmatprep.subr.bf16.mxu0 %v2908_v15  ;;  %v1328_v30 = vmax.f32 %v1290_v23, 0.0  ;;  %v1301_v36 = vadd.f32 %v2454_v18, %v3340_v45  ;;  %1902 = vbcast.lane.b32.xlu1 %v1896_v3, 264 }
 0x3a1   : > { %v1292_v22 = vpop.f32.mrf.mxu1  ;;  %1898 = vbcast.lane.b32.xlu0 %v1896_v3, 256 }
 0x3a2   : > { %v1293_v21 = vadd.f32 %v3340_v45, %v1292_v22  ;;  %2474 = vmatmul.mubr.msk.bf16.vlgmr.msra.gmra.mxu0 %vm756_vm2, %v3295_v29  ;;  %v1298_v29 = vadd.f32 %v2453_v9, %v3340_v45  ;;  %v1331_v43 = vmax.f32 %v1301_v36, 0.0 }
 0x3a3   : > { %v2457_v24 = vpop.f32.mrf.mxu1  ;;  %2478 = vmatpush3.bf16.msra.mxu0 %v1339_v19  ;;  %2479 = vmatprep.mubr.msk.bf16.mxu0 %vm2909_vm1, %v2908_v15 }
 0x3a4   : > { %v1314_v25 = vadd.f32 %v2457_v24, %v3340_v45  ;;  %2483 = vmatprep.subr.bf16.mxu0 %v2908_v15  ;;  %v1329_v26 = vmax.f32 %v1293_v21, 0.0  ;;  %v1330_v42 = vmax.f32 %v1298_v29, 0.0  ;;  %1913 = vbcast.lane.b32.xlu1 %v1907_v2, 264 }
 0x3a5   : > { %v1305_v28 = vpop.f32.mrf.mxu1  ;;  %1909 = vbcast.lane.b32.xlu0 %v1907_v2, 256 }
 0x3a6   : > { %v1334_v32 = vmax.f32 %v1314_v25, 0.0  ;;  %v1340_v37 = vpack.c.bf16 %v1329_v26, %v1328_v30  ;;  %v1341_v46 = vpack.c.bf16 %v1331_v43, %v1330_v42  ;;  %v1306_v47 = vadd.f32 %v3340_v45, %v1305_v28 }
 0x3a7   : > { %v2458_v31 = vpop.f32.mrf.mxu1 }
 0x3a8   : > { %v1317_v33 = vadd.f32 %v2458_v31, %v3340_v45  ;;  %1924 = vbcast.lane.b32.xlu1 %v1918_v4, 264 }
 0x3a9   : > { %v1308_v44 = vpop.f32.mrf.mxu1  ;;  %1920 = vbcast.lane.b32.xlu0 %v1918_v4, 256 }
 0x3aa   : > { %v1335_v39 = vmax.f32 %v1317_v33, 0.0  ;;  %2480 = vmatmul.mubr.msk.bf16.vlgmr.msra.gmra.mxu0 %vm756_vm2, %v3311_v35  ;;  %v1309_v48 = vadd.f32 %v3340_v45, %v1308_v44  ;;  %v1332_v35 = vmax.f32 %v1306_v47, 0.0  ;;  %v2655_v45 = vld [vmem:[#allocation11 + $0x20] sm:$0xff]  }
 0x3ab   : > { %2484 = vmatpush3.bf16.msra.mxu0 %v1340_v37  ;;  %2485 = vmatprep.mubr.msk.bf16.mxu0 %vm2909_vm1, %v2908_v15 }
 0x3ac   : > { %v1343_v40 = vpack.c.bf16 %v1335_v39, %v1334_v32  ;;  %2489 = vmatprep.subr.bf16.mxu0 %v2908_v15  ;;  %v1333_v49 = vmax.f32 %v1309_v48, 0.0  ;;  %1935 = vbcast.lane.b32.xlu1 %v1929_v5, 264 }
 0x3ad   : > { %1931 = vbcast.lane.b32.xlu0 %v1929_v5, 256 }
 0x3ae   : > { %2502 = vmatpush3.bf16.msra.mxu1 %v1343_v40  ;;  %v1342_v51 = vpack.c.bf16 %v1333_v49, %v1332_v35 }
 0x3b1   : > { %2504 = vmatmul.mubr.msk.bf16.vlgmr.msra.gmra.mxu1 %vm756_vm2, %v3306_v34  ;;  %v2653_v34 = vld [vmem:[#allocation11 + $0x30] sm:$0xff]  }
 0x3b2   : > { %2486 = vmatmul.mubr.msk.bf16.vlgmr.msra.gmra.mxu0 %vm756_vm2, %v3323_v38  ;;  %v2654_v38 = vld [vmem:[#allocation11 + $0x28] sm:$0xff]  }
 0x3b3   : > { %2490 = vmatpush3.bf16.msra.mxu0 %v1341_v46  ;;  %2491 = vmatprep.mubr.msk.bf16.mxu0 %vm2909_vm1, %v2908_v15 }
 0x3b4   : > { %2495 = vmatprep.subr.bf16.mxu0 %v2908_v15 }
 0x3ba   : > { %2492 = vmatmul.mubr.msk.bf16.vlgmr.msra.gmra.mxu0 %vm756_vm2, %v3290_v27  ;;  %v2656_v27 = vld [vmem:[#allocation11 + $0x18] sm:$0xff]  }
 0x3bb   : > { %2496 = vmatpush3.bf16.msra.mxu0 %v1342_v51  ;;  %2497 = vmatprep.mubr.msk.bf16.mxu0 %vm2909_vm1, %v2908_v15  ;;  %v2658_v15 = vld [vmem:[#allocation11 + $0x8] sm:$0xff]  }
 0x3bc   : > { %2507 = vmatprep.subr.bf16.mxu0 %v2652_v50 }
 0x3c2   : > { %2498 = vmatmul.mubr.msk.bf16.vlgmr.msra.gmra.mxu0 %vm756_vm2, %v3330_v41  ;;  %v2659_v41 = vld [vmem:[#allocation11] sm:$0xff]  }
 0x3c3   : > { %2508 = vmatpush3.bf16.msra.mxu0 %v2652_v50 }
 0x3c4   : > { %2509 = vmatprep.subr.bf16.mxu0 %v2653_v34 }
 0x3c7   : > { %2510 = vmatpush3.bf16.msra.mxu0 %v2653_v34 }
 0x3c8   : > { %2511 = vmatprep.subr.bf16.mxu0 %v2654_v38 }
 0x3cb   : > { %2512 = vmatpush3.bf16.msra.mxu0 %v2654_v38 }
 0x3cc   : > { %2513 = vmatprep.subr.bf16.mxu0 %v2655_v45 }
 0x3cf   : > { %2514 = vmatpush3.bf16.msra.mxu0 %v2655_v45 }
 0x3d0   : > { %2515 = vmatprep.subr.bf16.mxu0 %v2656_v27 }
 0x3d3   : > { %2516 = vmatpush3.bf16.msra.mxu0 %v2656_v27 }
 0x3d4   : > { %2517 = vmatprep.subr.bf16.mxu0 %v2657_v52 }
 0x3d7   : > { %2518 = vmatpush3.bf16.msra.mxu0 %v2657_v52  ;;  %v3413_v52 = vld [vmem:[%s3480_s7] ss:$0 sm:$0xff] }
 0x3d8   : > { %2519 = vmatprep.subr.bf16.mxu0 %v2658_v15 }
 0x3db   : > { %2520 = vmatpush3.bf16.msra.mxu0 %v2658_v15 }
 0x3dc   : > { %2521 = vmatprep.subr.bf16.mxu0 %v2659_v41 }
 0x3df   : > { %2522 = vmatpush3.bf16.msra.mxu0 %v2659_v41 }
 0x402   : > { %v1859_v48 = vpop.permute.xlu1 %1858 }
 0x403   : > { %v1855_v47 = vpop.permute.xlu0 %1854 }
 0x406   : > { %v1870_v50 = vpop.permute.xlu1 %1869 }
 0x407   : > { %v1866_v49 = vpop.permute.xlu0 %1865 }
 0x40a   : > { %v1881_v45 = vpop.permute.xlu1 %1880 }
 0x40b   : > { %v1877_v38 = vpop.permute.xlu0 %1876 }
 0x40e   : > { %v1892_v3 = vpop.permute.xlu1 %1891 }
 0x40f   : > { %v1888_v55 = vpop.permute.xlu0 %1887 }
 0x452   : > { %v1378_v58 = vpop.f32.mrf.mxu0 }
 0x454   : > { %v2463_v59 = vpop.f32.mrf.mxu0 }
 0x456   : > { %v1381_v7 = vpop.f32.mrf.mxu0 }
 0x457   : > { %v1672_v60 = vpack.c.bf16 %v1381_v7, %v1378_v58  ;;  %v1899_v7 = vpop.permute.xlu0 %1898 }
 0x458   : > { %v2464_v61 = vpop.f32.mrf.mxu0 }
 0x459   : > { %2523 = vmatprep.mubr.bf16.mxu0 %v1672_v60 }
 0x45a   : > { %v1419_v62 = vpop.f32.mrf.mxu0 }
 0x45c   : > { %v2469_v10 = vpop.f32.mrf.mxu0 }
 0x45e   : > { %v1422_v63 = vpop.f32.mrf.mxu0 }
 0x45f   : > { %v1673_v0 = vpack.c.bf16 %v1422_v63, %v1419_v62  ;;  %v1903_v62 = vpop.permute.xlu1 %1902 }
 0x460   : > { %v2470_v13 = vpop.f32.mrf.mxu0 }
 0x461   : > { %2524 = vmatmul.mubr.bf16.vlgmr.msra.gmra.mxu0 %v1673_v0 }
 0x462   : > { %v1460_v12 = vpop.f32.mrf.mxu0 }
 0x464   : > { %v2475_v6 = vpop.f32.mrf.mxu0 }
 0x466   : > { %v1463_v8 = vpop.f32.mrf.mxu0 }
 0x467   : > { %v1674_v9 = vpack.c.bf16 %v1463_v8, %v1460_v12 }
 0x468   : > { %v2476_v1 = vpop.f32.mrf.mxu0 }
 0x469   : > { %2527 = vmatprep.mubr.bf16.mxu0 %v1674_v9  ;;  %v1910_v1 = vpop.permute.xlu0 %1909 }
 0x46a   : > { %v1501_v20 = vpop.f32.mrf.mxu0 }
 0x46c   : > { %v2481_v11 = vpop.f32.mrf.mxu0 }
 0x46e   : > { %v1504_v14 = vpop.f32.mrf.mxu0 }
 0x46f   : > { %v1675_v16 = vpack.c.bf16 %v1504_v14, %v1501_v20  ;;  %v1914_v14 = vpop.permute.xlu1 %1913 }
 0x470   : > { %v2482_v17 = vpop.f32.mrf.mxu0 }
 0x471   : > { %2528 = vmatmul.mubr.bf16.gmra.mxu0 %v1675_v16  ;;  %v1665_v18 = vpop.f32.mrf.mxu1 }
 0x472   : > { %v1542_v19 = vpop.f32.mrf.mxu0 }
 0x473   : > { %v2505_v22 = vpop.f32.mrf.mxu1 }
 0x474   : > { %v2487_v21 = vpop.f32.mrf.mxu0 }
 0x475   : > { %v1668_v23 = vpop.f32.mrf.mxu1 }
 0x476   : > { %v1545_v24 = vpop.f32.mrf.mxu0  ;;  %v1679_v42 = vpack.c.bf16 %v1668_v23, %v1665_v18 }
 0x477   : > { %v1676_v25 = vpack.c.bf16 %v1545_v24, %v1542_v19  ;;  %v2506_v26 = vpop.f32.mrf.mxu1 }
 0x478   : > { %v2488_v28 = vpop.f32.mrf.mxu0 }
 0x479   : > { %2531 = vmatprep.mubr.bf16.mxu0 %v1676_v25 }
 0x47a   : > { %v1583_v30 = vpop.f32.mrf.mxu0 }
 0x47c   : > { %v2493_v31 = vpop.f32.mrf.mxu0 }
 0x47d   : > { %v1921_v31 = vpop.permute.xlu0 %1920 }
 0x47e   : > { %v1586_v32 = vpop.f32.mrf.mxu0 }
 0x47f   : > { %v1677_v33 = vpack.c.bf16 %v1586_v32, %v1583_v30 }
 0x480   : > { %v2494_v29 = vpop.f32.mrf.mxu0 }
 0x481   : > { %2532 = vmatmul.mubr.bf16.gmra.mxu0 %v1677_v33 }
 0x482   : > { %v1624_v36 = vpop.f32.mrf.mxu0 }
 0x484   : > { %v2499_v37 = vpop.f32.mrf.mxu0 }
 0x485   : > { %v1925_v37 = vpop.permute.xlu1 %1924 }
 0x486   : > { %v1627_v39 = vpop.f32.mrf.mxu0 }
 0x487   : > { %v1678_v40 = vpack.c.bf16 %v1627_v39, %v1624_v36 }
 0x488   : > { %v2500_v43 = vpop.f32.mrf.mxu0 }
 0x489   : > { %2535 = vmatprep.mubr.bf16.mxu0 %v1678_v40 }
 0x48a   : > { %2536 = vmatmul.mubr.bf16.gmra.mxu0 %v1679_v42 }
 0x521   : > { %v2525_v44 = vpop.f32.mrf.mxu0 }
 0x522   : > { %v1794_v2 = vadd.f32 %v2525_v44, %v3413_v52 }
 0x523   : > { %v1785_v46 = vpop.f32.mrf.mxu0 }
 0x524   : > { %v1786_v56 = vadd.f32 %v3413_v52, %v1785_v46  ;;  %v1939_v10 = vmul.f32 %v1866_v49, %v1794_v2 }
 0x525   : > { %v2526_v35 = vpop.f32.mrf.mxu0 }
 0x526   : > { %v1797_v53 = vadd.f32 %v2526_v35, %v3413_v52  ;;  %v1937_v60 = vmul.f32 %v1855_v47, %v1786_v56 }
 0x527   : > { %v1788_v51 = vpop.f32.mrf.mxu0 }
 0x528   : > { %v1789_v41 = vadd.f32 %v3413_v52, %v1788_v51  ;;  %v1940_v58 = vmul.f32 %v1870_v50, %v1797_v53 }
 0x52a   : > { %v1938_v5 = vmul.f32 %v1859_v48, %v1789_v41  ;;  %v1960_v12 = vadd.f32 %v1940_v58, %v1939_v10 }
 0x52c   : > { %v1953_v0 = vadd.f32 %v1938_v5, %v1937_v60  ;;  %v1961_v16 = vrot.slane %v1960_v12, 4 }
 0x52e   : > { %v1954_v20 = vrot.slane %v1953_v0, 4  ;;  %v1962_v26 = vadd.f32 %v1961_v16, %v1960_v12 }
 0x530   : > { %v1955_v23 = vadd.f32 %v1954_v20, %v1953_v0  ;;  %v1963_v47 = vrot.slane %v1962_v26, 2 }
 0x531   : > { %v2529_v34 = vpop.f32.mrf.mxu0 }
 0x532   : > { %v1810_v13 = vadd.f32 %v2529_v34, %v3413_v52  ;;  %v1956_v39 = vrot.slane %v1955_v23, 2  ;;  %v1932_v34 = vpop.permute.xlu0 %1931 }
 0x533   : > { %v1801_v27 = vpop.f32.mrf.mxu0 }
 0x534   : > { %v1802_v4 = vadd.f32 %v3413_v52, %v1801_v27  ;;  %v1943_v11 = vmul.f32 %v1888_v55, %v1810_v13  ;;  %v1964_v55 = vadd.f32 %v1963_v47, %v1962_v26 }
 0x535   : > { %v2530_v15 = vpop.f32.mrf.mxu0 }
 0x536   : > { %v1813_v61 = vadd.f32 %v2530_v15, %v3413_v52  ;;  %v1941_v63 = vmul.f32 %v1877_v38, %v1802_v4  ;;  %v1957_v38 = vadd.f32 %v1956_v39, %v1955_v23  ;;  %v1936_v15 = vpop.permute.xlu1 %1935 }
 0x537   : > { %v1804_v54 = vpop.f32.mrf.mxu0 }
 0x538   : > { %v1805_v57 = vadd.f32 %v3413_v52, %v1804_v54  ;;  %v1944_v8 = vmul.f32 %v1892_v3, %v1813_v61 }
 0x53a   : > { %v1942_v59 = vmul.f32 %v1881_v45, %v1805_v57  ;;  %v1974_v19 = vadd.f32 %v1944_v8, %v1943_v11 }
 0x53c   : > { %v1967_v6 = vadd.f32 %v1942_v59, %v1941_v63  ;;  %v1975_v32 = vrot.slane %v1974_v19, 4  ;;  %v1958_v59 = vrot.slane %v1957_v38, 1  ;;  %v1965_v63 = vrot.slane %v1964_v55, 1 }
 0x53e   : > { %v1968_v17 = vrot.slane %v1967_v6, 4  ;;  %v1976_v48 = vadd.f32 %v1975_v32, %v1974_v19 }
 0x540   : > { %v1969_v28 = vadd.f32 %v1968_v17, %v1967_v6  ;;  %v1977_v56 = vrot.slane %v1976_v48, 2 }
 0x541   : > { %v2533_v9 = vpop.f32.mrf.mxu0 }
 0x542   : > { %v1826_v22 = vadd.f32 %v2533_v9, %v3413_v52  ;;  %v1970_v46 = vrot.slane %v1969_v28, 2  ;;  %v1978_v0 = vadd.f32 %v1977_v56, %v1976_v48  ;;  %v1959_v9 = vadd.f32 %v1958_v59, %v1957_v38 }
 0x543   : > { %v1817_v18 = vpop.f32.mrf.mxu0 }
 0x544   : > { %v1818_v24 = vadd.f32 %v3413_v52, %v1817_v18  ;;  %v1947_v36 = vmul.f32 %v1910_v1, %v1826_v22  ;;  %v1971_v41 = vadd.f32 %v1970_v46, %v1969_v28  ;;  %v1979_v16 = vrot.slane %v1978_v0, 1 }
 0x545   : > { %v2534_v21 = vpop.f32.mrf.mxu0 }
 0x546   : > { %v1829_v25 = vadd.f32 %v2534_v21, %v3413_v52  ;;  %v1945_v40 = vmul.f32 %v1899_v7, %v1818_v24  ;;  %v1972_v60 = vrot.slane %v1971_v41, 1  ;;  %v1980_v26 = vadd.f32 %v1979_v16, %v1978_v0 }
 0x547   : > { %v1820_v30 = vpop.f32.mrf.mxu0 }
 0x548   : > { %v1821_v33 = vadd.f32 %v3413_v52, %v1820_v30  ;;  %v1948_v29 = vmul.f32 %v1914_v14, %v1829_v25  ;;  %v1973_v1 = vadd.f32 %v1972_v60, %v1971_v41  ;;  %v1966_v14 = vadd.f32 %v1965_v63, %v1964_v55 }
 0x54a   : > { %v1946_v42 = vmul.f32 %v1903_v62, %v1821_v33  ;;  %v2537_v43 = vpop.f32.mrf.mxu0  ;;  %v1988_v44 = vadd.f32 %v1948_v29, %v1947_v36  ;;  %v2018_v22 = vsel %vm2017_vm3, %v1966_v14, %v1959_v9 }
 0x54b   : > { %v1842_v51 = vadd.f32 %v2537_v43, %v3413_v52  ;;  %v2020_v21 = vsel %vm2019_vm4, %v1973_v1, %v2018_v22 }
 0x54c   : > { %v1981_v35 = vadd.f32 %v1946_v42, %v1945_v40  ;;  %v1989_v49 = vrot.slane %v1988_v44, 4  ;;  %v1833_v50 = vpop.f32.mrf.mxu0 }
 0x54d   : > { %v1834_v53 = vadd.f32 %v3413_v52, %v1833_v50  ;;  %v1951_v58 = vmul.f32 %v1932_v34, %v1842_v51 }
 0x54e   : > { %v1982_v45 = vrot.slane %v1981_v35, 4  ;;  %v2538_v27 = vpop.f32.mrf.mxu0  ;;  %v1990_v3 = vadd.f32 %v1989_v49, %v1988_v44 }
 0x54f   : > { %v1845_v54 = vadd.f32 %v2538_v27, %v3413_v52  ;;  %v1949_v61 = vmul.f32 %v1921_v31, %v1834_v53  ;;  %v2022_v31 = vsel %vm2021_vm5, %v1980_v26, %v2020_v21 }
 0x550   : > { %v1983_v57 = vadd.f32 %v1982_v45, %v1981_v35  ;;  %v1836_v2 = vpop.f32.mrf.mxu0  ;;  %v1991_v12 = vrot.slane %v1990_v3, 2 }
 0x551   : > { %v1837_v4 = vadd.f32 %v3413_v52, %v1836_v2  ;;  %v1952_v5 = vmul.f32 %v1936_v15, %v1845_v54 }
 0x552   : > { %v1984_v7 = vrot.slane %v1983_v57, 2  ;;  %v1992_v17 = vadd.f32 %v1991_v12, %v1990_v3 }
 0x553   : > { %v1950_v62 = vmul.f32 %v1925_v37, %v1837_v4  ;;  %v2002_v10 = vadd.f32 %v1952_v5, %v1951_v58 }
 0x554   : > { %v1985_v13 = vadd.f32 %v1984_v7, %v1983_v57  ;;  %v1993_v28 = vrot.slane %v1992_v17, 1 }
 0x555   : > { %v1995_v6 = vadd.f32 %v1950_v62, %v1949_v61  ;;  %v2003_v8 = vrot.slane %v2002_v10, 4 }
 0x556   : > { %v1986_v20 = vrot.slane %v1985_v13, 1  ;;  %v1994_v36 = vadd.f32 %v1993_v28, %v1992_v17 }
 0x557   : > { %v1996_v11 = vrot.slane %v1995_v6, 4  ;;  %v2004_v52 = vadd.f32 %v2003_v8, %v2002_v10 }
 0x558   : > { %v1987_v23 = vadd.f32 %v1986_v20, %v1985_v13 }
 0x559   : > { %v1997_v18 = vadd.f32 %v1996_v11, %v1995_v6  ;;  %v2005_v19 = vrot.slane %v2004_v52, 2 }
 0x55a   : > { %v2024_v29 = vsel %vm2023_vm6, %v1987_v23, %v2022_v31 }
 0x55b   : > { %v1998_v24 = vrot.slane %v1997_v18, 2  ;;  %v2006_v25 = vadd.f32 %v2005_v19, %v2004_v52  ;;  %v2026_v40 = vsel %vm2025_vm7, %v1994_v36, %v2024_v29 }
 0x55d   : > { %v1999_v30 = vadd.f32 %v1998_v24, %v1997_v18  ;;  %v2007_v32 = vrot.slane %v2006_v25, 1 }
 0x55f   : > { %v2000_v33 = vrot.slane %v1999_v30, 1  ;;  %v2008_v39 = vadd.f32 %v2007_v32, %v2006_v25 }
 0x561   : > { %v2001_v37 = vadd.f32 %v2000_v33, %v1999_v30 }
 0x563   : > { %v2028_v42 = vsel %vm2027_vm8, %v2001_v37, %v2026_v40 }
 0x564   : > { %v2030_v43 = vsel %vm2029_vm9, %v2008_v39, %v2028_v42 }
 0x565   : > { %2032 = vst [vmem:[%s439_s18] sm:$0xff] %v2030_v43 }
 0x566   : > { %2835 = shalt.err (!%p2832_p10)
}
 0x567   : > { %s2836_s14 = scalar_lea.hbm %s3436_s27, 128  ;;  %s2840_s19 = scalar_lea.hbm %s3481_s8, 256 }
 0x568   : > { %p2837_p1 = scmp.ne.s32.totalorder %s3436_s27, %s2836_s14  ;;  %p2841_p4 = scmp.lt.s32.totalorder %s3436_s27, %s3481_s8 }
 0x569   : > { %p2842_p11 = scmp.lt.s32.totalorder %s2840_s19, %s2836_s14 }
 0x56a   : > { %p2838_p5 = pnand %p2837_p1, %p3525_p2 }
 0x56b   : > { %p2843_p0 = por %p2842_p11, %p2841_p4 }
 0x56c   : > { %p2839_p12 = pneg %p2838_p5 }
 0x56e   : > { %p2844_p13 = pnand %p2843_p0, %p2839_p12 }
 0x570   : > { %2847 = shalt.err (!%p2844_p13)
}
 0x571   : > { %2561 = dma.vmem_to_hbm [thread:$0]  (%p3525_p2), %s2048_s26, 128, %s3436_s27, %s2034_s12  }
 0x572 PF: > { %s3526_s3 = sld [smem:[#allocation19_spill]]  ;;  %p3529_p3 = scmp.ge.s32.totalorder %s2898_s30, 2 }
 0x573   : > { %s3527_s16 = sld [smem:[#allocation23_spill]] }
 0x578   : > { %s2059_s4 = sand.u32 1, %s3526_s3  }
 0x579   : > { %p3528_p7 = scmp.ne.s32.totalorder %s3527_s16, 0  ;;  %s2060_s21 = scalar_lea.sflag [#allocation4], %s2059_s4 }
 0x57b   : > { %p2584_p6 = pnand %p3529_p3, %p3528_p7 }
 0x57d   : > { %p2585_p8 = pneg %p2584_p6 }
 0x57f   : > { %2881 = dma.done.wait (%p2585_p8), %s2060_s21, 128  }
 0x580   : > { %2883 = vsyncadd (%p2585_p8), %s2060_s21, 4294967168  ;;  %s3530_s30 = sld [smem:[#allocation21_spill]]  ;;  %s3533_s27 = smov %s2890_s28 }
 0x581   : > { %s3531_s25 = sld [smem:[#allocation20_spill]] }
 0x582   : > { %s3532_s29 = sld [smem:[#allocation22_spill]] }
 0x586   : > { %p26_p9 = scmp.ge.s32.totalorder %s3530_s30, 4  }
 0x587   : > { %s3534_s28 = smov %s3531_s25 }
 0x588   :  { %28 = sbr.rel (!%p26_p9) target bundleno = 13 (0xd), region = 133 }
 0x58d   :  { %2065 = vsyncpa [#allocation3], 1 }
 0x58e   :  { %2067 = vsyncpa [#allocation3 + $0x1], 1 }
 0x58f   :  { %2068 = vsyncpa [#allocation6], 1 }
 0x590   :  { %2070 = vsyncpa [#allocation6 + $0x1], 1 }
 0x591   :  { %2071 = vsyncpa [#allocation9], 1 }
 0x592   :  { %2072 = vsyncpa [#allocation12], 1 }
 0x593   :  { %2073 = vsyncpa [#allocation4], 1 }
 0x594   :  { %2075 = vsyncpa [#allocation4 + $0x1], 1 }

</bundles_post_ra>
